<compile_context>
chip_gen: v5e
topology: v5e:2x2
jax: 0.10.0
libtpu: 0.0.40
codegen_flags: <defaults>
</compile_context>

<pallas_src>
import math

import jax
import jax.numpy as jnp
from jax import lax
from jax.experimental import pallas as pl
from jax.experimental.pallas import tpu as pltpu


# ----------------------------------------------------------------------------
# Kernel
# ----------------------------------------------------------------------------
def _make_geglu_kernel(approximate: bool):
    inv_sqrt2 = 1.0 / math.sqrt(2.0)

    def kernel(x_ref, wv_ref, wg_ref, bv_ref, bg_ref, o_ref, accv_ref, accg_ref):
        k = pl.program_id(2)

        @pl.when(k == 0)
        def _():
            accv_ref[...] = jnp.zeros_like(accv_ref)
            accg_ref[...] = jnp.zeros_like(accg_ref)

        # bf16 MXU matmuls with f32 accumulation; cast is a no-op if x is bf16.
        x_bf16 = x_ref[...].astype(jnp.bfloat16)
        accv_ref[...] += jnp.dot(x_bf16, wv_ref[...],
                                 preferred_element_type=jnp.float32)
        accg_ref[...] += jnp.dot(x_bf16, wg_ref[...],
                                 preferred_element_type=jnp.float32)

        @pl.when(k == pl.num_programs(2) - 1)
        def _():
            v = accv_ref[...] + bv_ref[...]
            g = accg_ref[...] + bg_ref[...]
            if approximate:
                # tanh GELU: transcendental goes to the EUP, freeing VALU slots.
                g = jax.nn.gelu(g, approximate=True)
            else:
                # exact erf GELU: matches torch.nn.functional.gelu default.
                g = 0.5 * g * (1.0 + lax.erf(g * inv_sqrt2))
            o_ref[...] = (v * g).astype(o_ref.dtype)

    return kernel


# ----------------------------------------------------------------------------
# VMEM / MXU aware tile selection
# ----------------------------------------------------------------------------
def _vmem_capacity_bytes() -> int:
    try:
        info = pltpu.get_tpu_info()
        cap = getattr(info, "vmem_capacity_bytes", None)
        if cap:
            return int(cap)
    except Exception:
        pass
    return 64 * 1024 * 1024  # conservative: v7x per-TensorCore VMEM


def _mxu_align() -> int:
    try:
        kind = jax.devices()[0].device_kind.lower()
        if "v6" in kind or "v7" in kind:
            return 256  # 2x256x256 MXUs
    except Exception:
        pass
    return 128  # v5e and older: 128-wide MXU passes


def _footprint_bytes(tm, tk, tn, x_bytes, out_bytes):
    x_buf = 2 * tm * tk * x_bytes       # double-buffered activation tile
    w_buf = 2 * 2 * tk * tn * 2         # wv + wg tiles, bf16, double-buffered
    b_buf = 2 * 2 * tn * 4              # biases (double-buffered, negligible)
    o_buf = 2 * tm * tn * out_bytes     # double-buffered output tile
    acc_buf = 2 * tm * tn * 4           # two resident f32 accumulators
    return x_buf + w_buf + b_buf + o_buf + acc_buf


def _select_tiles(m, din, dout, x_bytes, out_bytes, vmem_budget, mxu_align):
    def best_div(dim, cands):
        for c in cands:
            if c <= dim and dim % c == 0:
                return c
        return dim  # full extent (always legal for the (8,128) rule)

    tm = best_div(m, (1024, 512, 256, 128, 64, 32, 16, 8))
    tk = best_div(din, tuple(mxu_align * s for s in (8, 4, 2, 1)))
    tn = best_div(dout, tuple(mxu_align * s for s in (8, 4, 2, 1)))

    def can_halve(t, align):
        return t % 2 == 0 and (t // 2) % align == 0

    # Greedy shrink to fit the VMEM budget: rows first, then K, then N
    # (keeps the MXU-facing N tile as wide as possible).
    for _ in range(64):
        if _footprint_bytes(tm, tk, tn, x_bytes, out_bytes) <= vmem_budget:
            break
        if tm > 8 and can_halve(tm, 8):
            tm //= 2
            continue
        if tk > mxu_align and can_halve(tk, 128):
            tk //= 2
            continue
        if tn > mxu_align and can_halve(tn, 128):
            tn //= 2
            continue
        break
    return tm, tn, tk


# ----------------------------------------------------------------------------
# Wrapper
# ----------------------------------------------------------------------------
def geglu(x, params, *, approximate=False, tiles=None, out_dtype=None):
    """GEGLU forward.

    x: (..., dim_in). params: dict from make_params().
    tiles: optional manual (tm, tn, tk) override.
    out_dtype: output dtype (default x.dtype); pass bf16 to halve writeback HBM.
    """
    *lead, din = x.shape
    wv, wg = params["wv"], params["wg"]   # (din, dout) bf16
    bv, bg = params["bv"], params["bg"]   # (1, dout)  f32
    dout = wv.shape[1]
    out_dtype = x.dtype if out_dtype is None else out_dtype

    x2 = x.reshape(-1, din)
    m = x2.shape[0]

    x_bytes = jnp.dtype(x.dtype).itemsize
    out_bytes = jnp.dtype(out_dtype).itemsize

    cap = _vmem_capacity_bytes()
    vmem_limit = min(int(0.9 * cap), 128 * 1024 * 1024)
    budget = int(0.8 * vmem_limit)  # ~20% headroom for Mosaic internal scratch

    if tiles is not None:
        tm, tn, tk = tiles
    else:
        tm, tn, tk = _select_tiles(m, din, dout, x_bytes, out_bytes, budget,
                                   _mxu_align())

    assert m % tm == 0, "flattened token count must divide the row tile"
    assert dout % tn == 0, "dim_out must divide the N tile"
    assert din % tk == 0, "dim_in must divide the K tile"

    # Make sure the scoped limit covers whatever tiles we ended up with.
    vmem_limit = max(vmem_limit,
                     int(1.25 * _footprint_bytes(tm, tk, tn, x_bytes, out_bytes)))

    grid = (m // tm, dout // tn, din // tk)

    out = pl.pallas_call(
        _make_geglu_kernel(approximate),
        out_shape=jax.ShapeDtypeStruct((m, dout), out_dtype),
        grid_spec=pltpu.PrefetchScalarGridSpec(
            num_scalar_prefetch=0,
            grid=grid,
            in_specs=[
                pl.BlockSpec((tm, tk), lambda i, j, k: (i, k)),   # x row/K tile
                pl.BlockSpec((tk, tn), lambda i, j, k: (k, j)),   # value weights
                pl.BlockSpec((tk, tn), lambda i, j, k: (k, j)),   # gate weights
                pl.BlockSpec((1, tn), lambda i, j, k: (0, j)),    # value bias
                pl.BlockSpec((1, tn), lambda i, j, k: (0, j)),    # gate bias
            ],
            out_specs=pl.BlockSpec((tm, tn), lambda i, j, k: (i, j)),
            scratch_shapes=[
                pltpu.VMEM((tm, tn), jnp.float32),   # value accumulator
                pltpu.VMEM((tm, tn), jnp.float32),   # gate accumulator
            ],
        ),
        compiler_params=pltpu.CompilerParams(
            # rows / output columns independent -> shardable; K is a reduction.
            dimension_semantics=("parallel", "parallel", "arbitrary"),
            vmem_limit_bytes=int(vmem_limit),
        ),
    )(x2, wv, wg, bv, bg)
    return out.reshape(*lead, dout)


# ----------------------------------------------------------------------------
# Parameter construction (emulates torch nn.Linear(dim_in, 2*dim_out) init)
# ----------------------------------------------------------------------------
def make_params(key, dim_in, dim_out):
    kw, kb = jax.random.split(key)
    bound = 1.0 / math.sqrt(dim_in)
    w = jax.random.uniform(kw, (2 * dim_out, dim_in), jnp.float32, -bound, bound)
    b = jax.random.uniform(kb, (2 * dim_out,), jnp.float32, -bound, bound)
    params = {
        "wv": jnp.asarray(w[:dim_out].T, jnp.bfloat16),   # value half, (din, dout)
        "wg": jnp.asarray(w[dim_out:].T, jnp.bfloat16),   # gate  half, (din, dout)
        "bv": b[:dim_out].reshape(1, dim_out),
        "bg": b[dim_out:].reshape(1, dim_out),
    }
    return params, (w, b)


# ----------------------------------------------------------------------------
# References
# ----------------------------------------------------------------------------
def _gelu_erf(x):
    return 0.5 * x * (1.0 + lax.erf(x / math.sqrt(2.0)))


def _reference_f32(x, w, b):
    """Pure-f32 module semantics: proj -> chunk -> value * gelu(gate)."""
    h = jnp.matmul(x, w.T, precision=lax.Precision.HIGHEST) + b
    v, gate = jnp.split(h, 2, axis=-1)
    return v * _gelu_erf(gate)


def _reference_bf16(x, w, b):
    """Same math with inputs/weights rounded to bf16 (mirrors kernel numerics).

    Note: bf16 weights mean ~1e-2-level deviation from torch's f32 nn.Linear.
    """
    xb = x.astype(jnp.bfloat16).astype(jnp.float32)
    wb = w.astype(jnp.bfloat16).astype(jnp.float32)
    h = jnp.matmul(xb, wb.T, precision=lax.Precision.HIGHEST) + b
    v, gate = jnp.split(h, 2, axis=-1)
    return v * _gelu_erf(gate)


# ----------------------------------------------------------------------------
# Demo / self-test
# ----------------------------------------------------------------------------
if __name__ == "__main__":
    # Small demo shapes consistent with the module: (batch, seq, dim_in).
    B, N, dim_in, dim_out = 2, 8, 32, 32
    key = jax.random.PRNGKey(0)
    kx, kp = jax.random.split(key)
    x = jax.random.normal(kx, (B, N, dim_in), jnp.float32)
    params, (w, b) = make_params(kp, dim_in, dim_out)

    out = jax.block_until_ready(geglu(x, params))
    assert out.shape == (B, N, dim_out)
    # Tight check vs. the kernel's bf16-input numerics, loose vs. pure f32.
    assert jnp.max(jnp.abs(out - _reference_bf16(x, w, b))) < 2e-3
    assert jnp.max(jnp.abs(out - _reference_f32(x, w, b))) < 1e-1

    # Multi-step row-tiled grid path (grid i = 8).
    x_big = jax.random.normal(jax.random.PRNGKey(1), (16, 128, dim_in), jnp.float32)
    out_big = jax.block_until_ready(geglu(x_big, params, tiles=(256, 32, 32)))
    assert out_big.shape == (16, 128, dim_out)
    assert jnp.max(jnp.abs(out_big - _reference_bf16(x_big, w, b))) < 2e-3

    # Multi-step M/N/K grid: exercises the K-accumulation + epilogue path.
    din2, dout2 = 256, 256
    params2, (w2, b2) = make_params(jax.random.PRNGKey(2), din2, dout2)
    x_mnk = jax.random.normal(jax.random.PRNGKey(3), (2, 128, din2), jnp.float32)
    out_mnk = jax.block_until_ready(geglu(x_mnk, params2, tiles=(128, 128, 128)))
    assert out_mnk.shape == (2, 128, dout2)
    assert jnp.max(jnp.abs(out_mnk - _reference_bf16(x_mnk, w2, b2))) < 5e-3

    print("KERNEL_OK")
</pallas_src>

<mosaic_0001>
module attributes {stable_mosaic.version = 11 : i64} {
  func.func @kernel(%arg0: i32, %arg1: i32, %arg2: i32, %arg3: memref<16x32xf32, #tpu.memory_space<vmem>>, %arg4: memref<32x32xbf16, #tpu.memory_space<vmem>>, %arg5: memref<32x32xbf16, #tpu.memory_space<vmem>>, %arg6: memref<1x32xf32, #tpu.memory_space<vmem>>, %arg7: memref<1x32xf32, #tpu.memory_space<vmem>>, %arg8: memref<16x32xf32, #tpu.memory_space<vmem>>, %arg9: memref<16x32xf32, #tpu.memory_space<vmem>>, %arg10: memref<16x32xf32, #tpu.memory_space<vmem>>) attributes {dimension_semantics = [#tpu.dimension_semantics<parallel>, #tpu.dimension_semantics<parallel>, #tpu.dimension_semantics<arbitrary>], iteration_bounds = array<i64: 1, 1, 1>, scalar_prefetch = 0 : i64, scratch_operands = 2 : i64, tpu.core_type = #tpu.core_type<tc>, window_params = [{transform_indices = @transform_0, window_bounds = array<i64: 16, 32>}, {transform_indices = @transform_1, window_bounds = array<i64: 32, 32>}, {transform_indices = @transform_2, window_bounds = array<i64: 32, 32>}, {transform_indices = @transform_3, window_bounds = array<i64: 1, 32>}, {transform_indices = @transform_4, window_bounds = array<i64: 1, 32>}, {transform_indices = @transform_5, window_bounds = array<i64: 16, 32>}]} {
    %c0_i32 = arith.constant 0 : i32
    %0 = arith.cmpi eq, %arg2, %c0_i32 : i32
    %1 = arith.extui %0 : i1 to i32
    %c0_i32_0 = arith.constant 0 : i32
    %2 = arith.cmpi ne, %1, %c0_i32_0 : i32
    scf.if %2 {
      %cst_17 = arith.constant 0.000000e+00 : f32
      %18 = vector.broadcast %cst_17 : f32 to vector<16x32xf32>
      %c0_18 = arith.constant 0 : index
      %c0_19 = arith.constant 0 : index
      %19 = vector.load %arg9[%c0_18, %c0_19] : memref<16x32xf32, #tpu.memory_space<vmem>>, vector<16x32xf32>
      tpu.vector_store %arg9[%c0_18, %c0_19], %18 {strides = array<i32>} : memref<16x32xf32, #tpu.memory_space<vmem>>, vector<16x32xf32>,
      %cst_20 = arith.constant 0.000000e+00 : f32
      %20 = vector.broadcast %cst_20 : f32 to vector<16x32xf32>
      %c0_21 = arith.constant 0 : index
      %c0_22 = arith.constant 0 : index
      %21 = vector.load %arg10[%c0_21, %c0_22] : memref<16x32xf32, #tpu.memory_space<vmem>>, vector<16x32xf32>
      tpu.vector_store %arg10[%c0_21, %c0_22], %20 {strides = array<i32>} : memref<16x32xf32, #tpu.memory_space<vmem>>, vector<16x32xf32>,
    } else {
    }
    %c0 = arith.constant 0 : index
    %c0_1 = arith.constant 0 : index
    %3 = vector.load %arg3[%c0, %c0_1] : memref<16x32xf32, #tpu.memory_space<vmem>>, vector<16x32xf32>
    %4 = arith.truncf %3 : vector<16x32xf32> to vector<16x32xbf16>
    %c0_2 = arith.constant 0 : index
    %c0_3 = arith.constant 0 : index
    %5 = vector.load %arg9[%c0_2, %c0_3] : memref<16x32xf32, #tpu.memory_space<vmem>>, vector<16x32xf32>
    %c0_4 = arith.constant 0 : index
    %c0_5 = arith.constant 0 : index
    %6 = vector.load %arg4[%c0_4, %c0_5] : memref<32x32xbf16, #tpu.memory_space<vmem>>, vector<32x32xbf16>
    %cst = arith.constant dense<0.000000e+00> : vector<16x32xf32>
    %7 = tpu.matmul %4, %6, %cst {dimension_numbers = #tpu.dot_dimension_numbers<[1], [0], [0], [1], [0, 0, 1, 1], [], []>} : vector<16x32xbf16>, vector<32x32xbf16>, vector<16x32xf32> -> vector<16x32xf32>
    %8 = arith.addf %5, %7 : vector<16x32xf32>
    %c0_6 = arith.constant 0 : index
    %c0_7 = arith.constant 0 : index
    %9 = vector.load %arg9[%c0_6, %c0_7] : memref<16x32xf32, #tpu.memory_space<vmem>>, vector<16x32xf32>
    tpu.vector_store %arg9[%c0_6, %c0_7], %8 {strides = array<i32>} : memref<16x32xf32, #tpu.memory_space<vmem>>, vector<16x32xf32>,
    %c0_8 = arith.constant 0 : index
    %c0_9 = arith.constant 0 : index
    %10 = vector.load %arg10[%c0_8, %c0_9] : memref<16x32xf32, #tpu.memory_space<vmem>>, vector<16x32xf32>
    %c0_10 = arith.constant 0 : index
    %c0_11 = arith.constant 0 : index
    %11 = vector.load %arg5[%c0_10, %c0_11] : memref<32x32xbf16, #tpu.memory_space<vmem>>, vector<32x32xbf16>
    %cst_12 = arith.constant dense<0.000000e+00> : vector<16x32xf32>
    %12 = tpu.matmul %4, %11, %cst_12 {dimension_numbers = #tpu.dot_dimension_numbers<[1], [0], [0], [1], [0, 0, 1, 1], [], []>} : vector<16x32xbf16>, vector<32x32xbf16>, vector<16x32xf32> -> vector<16x32xf32>
    %13 = arith.addf %10, %12 : vector<16x32xf32>
    %c0_13 = arith.constant 0 : index
    %c0_14 = arith.constant 0 : index
    %14 = vector.load %arg10[%c0_13, %c0_14] : memref<16x32xf32, #tpu.memory_space<vmem>>, vector<16x32xf32>
    tpu.vector_store %arg10[%c0_13, %c0_14], %13 {strides = array<i32>} : memref<16x32xf32, #tpu.memory_space<vmem>>, vector<16x32xf32>,
    %c0_i32_15 = arith.constant 0 : i32
    %15 = arith.cmpi eq, %arg2, %c0_i32_15 : i32
    %16 = arith.extui %15 : i1 to i32
    %c0_i32_16 = arith.constant 0 : i32
    %17 = arith.cmpi ne, %16, %c0_i32_16 : i32
    scf.if %17 {
      %c0_17 = arith.constant 0 : index
      %c0_18 = arith.constant 0 : index
      %18 = vector.load %arg9[%c0_17, %c0_18] : memref<16x32xf32, #tpu.memory_space<vmem>>, vector<16x32xf32>
      %c0_19 = arith.constant 0 : index
      %c0_20 = arith.constant 0 : index
      %19 = vector.load %arg6[%c0_19, %c0_20] : memref<1x32xf32, #tpu.memory_space<vmem>>, vector<1x32xf32>
      %20 = vector.broadcast %19 : vector<1x32xf32> to vector<16x32xf32>
      %21 = arith.addf %18, %20 : vector<16x32xf32>
      %c0_21 = arith.constant 0 : index
      %c0_22 = arith.constant 0 : index
      %22 = vector.load %arg10[%c0_21, %c0_22] : memref<16x32xf32, #tpu.memory_space<vmem>>, vector<16x32xf32>
      %c0_23 = arith.constant 0 : index
      %c0_24 = arith.constant 0 : index
      %23 = vector.load %arg7[%c0_23, %c0_24] : memref<1x32xf32, #tpu.memory_space<vmem>>, vector<1x32xf32>
      %24 = vector.broadcast %23 : vector<1x32xf32> to vector<16x32xf32>
      %25 = arith.addf %22, %24 : vector<16x32xf32>
      %cst_25 = arith.constant 5.000000e-01 : f32
      %26 = vector.broadcast %cst_25 : f32 to vector<16x32xf32>
      %27 = arith.mulf %26, %25 : vector<16x32xf32>
      %cst_26 = arith.constant 0.707106769 : f32
      %28 = vector.broadcast %cst_26 : f32 to vector<16x32xf32>
      %29 = arith.mulf %25, %28 : vector<16x32xf32>
      %30 = math.erf %29 : vector<16x32xf32>
      %cst_27 = arith.constant 1.000000e+00 : f32
      %31 = vector.broadcast %cst_27 : f32 to vector<16x32xf32>
      %32 = arith.addf %31, %30 : vector<16x32xf32>
      %33 = arith.mulf %27, %32 : vector<16x32xf32>
      %34 = arith.mulf %21, %33 : vector<16x32xf32>
      %c0_28 = arith.constant 0 : index
      %c0_29 = arith.constant 0 : index
      %35 = vector.load %arg8[%c0_28, %c0_29] : memref<16x32xf32, #tpu.memory_space<vmem>>, vector<16x32xf32>
      tpu.vector_store %arg8[%c0_28, %c0_29], %34 {strides = array<i32>} : memref<16x32xf32, #tpu.memory_space<vmem>>, vector<16x32xf32>,
    } else {
    }
    return
  }
  func.func @transform_0(%arg0: i32, %arg1: i32, %arg2: i32) -> (i32, i32) {
    %c0_i32 = arith.constant 0 : i32
    return %arg0, %arg2 : i32, i32
  }
  func.func @transform_1(%arg0: i32, %arg1: i32, %arg2: i32) -> (i32, i32) {
    %c0_i32 = arith.constant 0 : i32
    return %arg2, %arg1 : i32, i32
  }
  func.func @transform_2(%arg0: i32, %arg1: i32, %arg2: i32) -> (i32, i32) {
    %c0_i32 = arith.constant 0 : i32
    return %arg2, %arg1 : i32, i32
  }
  func.func @transform_3(%arg0: i32, %arg1: i32, %arg2: i32) -> (i32, i32) {
    %c0_i32 = arith.constant 0 : i32
    %c0_i32_0 = arith.constant 0 : i32
    return %c0_i32, %arg1 : i32, i32
  }
  func.func @transform_4(%arg0: i32, %arg1: i32, %arg2: i32) -> (i32, i32) {
    %c0_i32 = arith.constant 0 : i32
    %c0_i32_0 = arith.constant 0 : i32
    return %c0_i32, %arg1 : i32, i32
  }
  func.func @transform_5(%arg0: i32, %arg1: i32, %arg2: i32) -> (i32, i32) {
    %c0_i32 = arith.constant 0 : i32
    return %arg0, %arg1 : i32, i32
  }
}

</mosaic_0001>

<bundles_post_ra>
// kernel: tpu_custom_call.1
= control target key start
LH: loop header
LB: loop body
LE: loop exit
PB: predicated region body
PF: predicated region fallthrough
CT: control target
= control target key end

     0   :  { %10 = vsyncpa [#allocation5], 0  ;;  %s517_s0 = inlined_call_operand.hbm [shape: f32[16,32], index: 0, kind: input, shape index: {}]   ;;  %s518_s1 = inlined_call_operand.hbm [shape: bf16[32,32], index: 1, kind: input, shape index: {}]   ;;  %s519_s2 = inlined_call_operand.hbm [shape: bf16[32,32], index: 2, kind: input, shape index: {}]   ;;  %s520_s3 = inlined_call_operand.vmem [shape: f32[1,32], index: 3, kind: input, shape index: {}]   ;;  %s521_s4 = inlined_call_operand.vmem [shape: f32[1,32], index: 4, kind: input, shape index: {}]   ;;  %s522_s5 = inlined_call_operand.hbm [shape: f32[16,32], index: 5, kind: output, shape index: {}]  }
   0x1   :  { %11 = vsyncpa [#allocation8], 0  ;;  %s30_s20 = sshll.u32 %s518_s1, 4  ;;  %s31_s20 = int_to_ptr.hbm [resolvable:$true] %s30_s20 }
   0x2   :  { %12 = vsyncpa [#allocation6], 0  ;;  %s429_s21 = smov [#allocation7]   ;;  %s17_s25 = sshll.u32 %s517_s0, 4  ;;  %s18_s25 = int_to_ptr.hbm [resolvable:$true] %s17_s25 }
   0x3   :  { %s32_s22 = sshll.u32 %s429_s21, 4  ;;  %s430_s26 = smov 64   ;;  %s33_s22 = int_to_ptr.vmem [resolvable:$true] %s32_s22 }
   0x4   :  { %s431_s27 = smov 4   ;;  %s432_s28 = smov [#allocation4]  }
   0x5   :  { %38 = dma.hbm_to_vmem [thread:$0]  %s31_s20, 256, %s33_s22, [#allocation8], %s430_s26, %s430_s26, %s431_s27  }
   0x6   :  { %s19_s29 = sshll.u32 %s432_s28, 4  ;;  %s433_s30 = smov 128   ;;  %s20_s29 = int_to_ptr.vmem [resolvable:$true] %s19_s29 }
   0x7   :  { %s434_s6 = smov 8   ;;  %s43_s8 = sshll.u32 %s519_s2, 4  ;;  %s44_s8 = int_to_ptr.hbm [resolvable:$true] %s43_s8 }
   0x8   :  { %25 = dma.hbm_to_vmem [thread:$0]  %s18_s25, 256, %s20_s29, [#allocation5], %s433_s30, %s433_s30, %s434_s6  }
   0x9   :  { %s435_s9 = smov [#allocation9]  }
   0xa   :  { %s45_s0 = sshll.u32 %s435_s9, 4  ;;  %s46_s0 = int_to_ptr.vmem [resolvable:$true] %s45_s0 }
   0xb   :  { %51 = dma.hbm_to_vmem [thread:$0]  %s44_s8, 256, %s46_s0, [#allocation8], %s430_s26, %s430_s26, %s431_s27  }
   0xc   :  { %423 = dma.done.wait [#allocation5], 256  }
   0xd   :  { %424 = vsyncadd [#allocation5], 4294967040 }
   0xe   :  { %425 = dma.done.wait [#allocation8], 512  }
   0xf   :  { %426 = vsyncadd [#allocation8], 4294966784  ;;  %vm73_vm0 = vcmask 261120   ;;  %v436_v0 = vmov 0.0   ;;  %v311_v1 = vld [vmem:[#allocation9 + $0x8] sm:$0xff]  ;;  %v310_v2 = vld [vmem:[#allocation9] sm:$0xff] }
  0x10   :  { %76 = vst.msk [vmem:[#allocation3] sm:$0xff] %vm73_vm0, %v436_v0  ;;  %v78_v3 = vld [vmem:[#allocation4] sm:$0xff]  ;;  %v309_v4 = vld [vmem:[#allocation7 + $0x8] sm:$0xff]  ;;  %145 = vmatpush.bf16.msra.mxu1 %v311_v1  ;;  %v79_v5 = vld [vmem:[#allocation4 + $0x8] sm:$0xff]  ;;  %s274_s15 = sshll.u32 %s522_s5, 4  ;;  %s275_s15 = int_to_ptr.hbm [resolvable:$true] %s274_s15 }
  0x11   :  { %74 = vst.msk [vmem:[#allocation2] sm:$0xff] %vm73_vm0, %v436_v0  ;;  %109 = vmatpush.bf16.msra.mxu0 %v309_v4  ;;  %v308_v6 = vld [vmem:[#allocation7] sm:$0xff]  ;;  %v80_v7 = vpack.c.bf16 %v79_v5, %v78_v3  ;;  %v322_v16 = vld [vmem:[%s521_s4] ss:$0 sm:$0xff] }
  0x12   :  { %75 = vst.msk [vmem:[#allocation2 + $0x8] sm:$0xff] %vm73_vm0, %v436_v0 }
  0x13   :  { %77 = vst.msk [vmem:[#allocation3 + $0x8] sm:$0xff] %vm73_vm0, %v436_v0 }
  0x14   :  { %146 = vmatpush.bf16.msra.mxu1 %v310_v2 }
  0x15   :  { %110 = vmatpush.bf16.msra.mxu0 %v308_v6 }
  0x17   :  { %305 = vmatmul.msk.bf16.vlgmr.msra.gmra.mxu1 %vm73_vm0, %v80_v7  ;;  %v121_v8 = vld [vmem:[#allocation3] sm:$0xff] }
  0x18   :  { %296 = vmatmul.msk.bf16.vlgmr.msra.gmra.mxu0 %vm73_vm0, %v80_v7  ;;  %v81_v9 = vld [vmem:[#allocation2] sm:$0xff] }
  0x19   :  { %v82_v15 = vld [vmem:[#allocation2 + $0x8] sm:$0xff] }
  0x1a   :  { %v122_v14 = vld [vmem:[#allocation3 + $0x8] sm:$0xff] }
  0x94   :  { %v148_v10 = vpop.f32.mrf.mxu1 }
  0x95   :  { %v153_v11 = vadd.f32 %v148_v10, %v121_v8  ;;  %v112_v12 = vpop.f32.mrf.mxu0 }
  0x96   :  { %v117_v13 = vadd.f32 %v112_v12, %v81_v9 }
  0x97   :  { %155 = vst.msk [vmem:[#allocation3] sm:$0xff] %vm73_vm0, %v153_v11 }
  0x98   :  { %119 = vst.msk [vmem:[#allocation2] sm:$0xff] %vm73_vm0, %v117_v13 }
  0x9c   :  { %v150_v17 = vpop.f32.mrf.mxu1 }
  0x9d   :  { %v154_v18 = vadd.f32 %v150_v17, %v122_v14  ;;  %v114_v19 = vpop.f32.mrf.mxu0 }
  0x9e   :  { %v118_v20 = vadd.f32 %v114_v19, %v82_v15  ;;  %v168_v21 = vld [vmem:[#allocation3] sm:$0xff] }
  0x9f   :  { %156 = vst.msk [vmem:[#allocation3 + $0x8] sm:$0xff] %vm73_vm0, %v154_v18  ;;  %v492_v22 = vadd.f32 %v322_v16, %v168_v21 }
  0xa0   :  { %120 = vst.msk [vmem:[#allocation2 + $0x8] sm:$0xff] %vm73_vm0, %v118_v20  ;;  %v321_v20 = vld [vmem:[%s520_s3] ss:$0 sm:$0xff]  ;;  %s437_s3 = smov [#allocation10]  }
  0xa1   :  { %v178_v23 = vmul.f32 0.70710677, %v492_v22  ;;  %s272_s12 = sshll.u32 %s437_s3, 4  ;;  %s273_s12 = int_to_ptr.vmem [resolvable:$true] %s272_s12 }
  0xa3   :  { %v180_v24 = vmul.f32 %v178_v23, %v178_v23 }
  0xa5   :  { %v181_v25 = vmin.f32 %v180_v24, 16.0 }
  0xa6   :  { %v169_v26 = vld [vmem:[#allocation3 + $0x8] sm:$0xff] }
  0xa7   :  { %v496_v27 = vadd.f32 %v322_v16, %v169_v26  ;;  %v182_v28 = vmul.f32 2.1237322e-06, %v181_v25  ;;  %v193_v29 = vmul.f32 3.8918573e-05, %v181_v25 }
  0xa9   :  { %v499_v30 = vmul.f32 0.70710677, %v496_v27  ;;  %v183_v31 = vadd.f32 0.00028619796, %v182_v28  ;;  %v194_v32 = vadd.f32 0.001143296, %v193_v29 }
  0xab   :  { %v184_v33 = vmul.f32 %v183_v31, %v181_v25  ;;  %v220_v34 = vmul.f32 %v499_v30, %v499_v30  ;;  %v195_v35 = vmul.f32 %v194_v32, %v181_v25 }
  0xad   :  { %v221_v36 = vmin.f32 %v220_v34, 16.0  ;;  %v196_v37 = vadd.f32 0.014752088, %v195_v35  ;;  %v185_v38 = vadd.f32 0.0036580483, %v184_v33 }
  0xaf   :  { %v222_v39 = vmul.f32 2.1237322e-06, %v221_v36  ;;  %v233_v40 = vmul.f32 3.8918573e-05, %v221_v36  ;;  %v197_v41 = vmul.f32 %v196_v37, %v181_v25  ;;  %v186_v45 = vmul.f32 %v185_v38, %v181_v25 }
  0xb1   :  { %v223_v42 = vadd.f32 0.00028619796, %v222_v39  ;;  %v234_v43 = vadd.f32 0.001143296, %v233_v40  ;;  %v198_v44 = vadd.f32 0.112945676, %v197_v41 }
  0xb2   :  { %v187_v52 = vadd.f32 0.05243302, %v186_v45 }
  0xb3   :  { %v224_v46 = vmul.f32 %v223_v42, %v221_v36  ;;  %v235_v47 = vmul.f32 %v234_v43, %v221_v36  ;;  %v199_v48 = vmul.f32 %v198_v44, %v181_v25  ;;  %v161_v43 = vld [vmem:[#allocation2 + $0x8] sm:$0xff]  ;;  %v177_v44 = vmul.f32 0.5, %v496_v27 }
  0xb4   :  { %v188_v58 = vmul.f32 %v187_v52, %v181_v25 }
  0xb5   :  { %v236_v49 = vadd.f32 0.014752088, %v235_v47  ;;  %v200_v50 = vadd.f32 0.4994258, %v199_v48  ;;  %v225_v51 = vadd.f32 0.0036580483, %v224_v46 }
  0xb6   :  { %v189_v62 = vadd.f32 0.18741608, %v188_v58 }
  0xb7   :  { %v237_v53 = vmul.f32 %v236_v49, %v221_v36  ;;  %v201_v54 = vmul.f32 %v200_v50, %v181_v25  ;;  %v226_v57 = vmul.f32 %v225_v51, %v221_v36 }
  0xb8   :  { %v190_v3 = vmul.f32 %v189_v62, %v181_v25  ;;  %v160_v25 = vld [vmem:[#allocation2] sm:$0xff] }
  0xb9   :  { %v238_v55 = vadd.f32 0.112945676, %v237_v53  ;;  %v202_v56 = vadd.f32 1.0, %v201_v54  ;;  %v227_v61 = vadd.f32 0.05243302, %v226_v57  ;;  %v166_v33 = vadd.f32 %v321_v20, %v160_v25 }
  0xba   :  { %v191_v8 = vadd.f32 1.1283791, %v190_v3 }
  0xbb   :  { %v239_v59 = vmul.f32 %v238_v55, %v221_v36  ;;  %323 = vrcp.f32 %v202_v56  ;;  %v228_v2 = vmul.f32 %v227_v61, %v221_v36  ;;  %v214_v6 = vand.u32 2147483648, %v202_v56 }
  0xbc   :  { %v212_v10 = vand.u32 2147483647, %v202_v56  ;;  %vm208_vm2 = vweird.f32 %v202_v56  ;;  %v192_v16 = vmul.f32 %v191_v8, %v178_v23  ;;  %v176_v23 = vmul.f32 0.5, %v492_v22 }
  0xbd   :  { %v240_v60 = vadd.f32 0.4994258, %v239_v59  ;;  %v229_v7 = vadd.f32 0.18741608, %v228_v2  ;;  %v215_v13 = vor.u32 1.1754944e-38, %v214_v6  ;;  %v167_v22 = vadd.f32 %v321_v20, %v161_v43 }
  0xbe   :  { %vm213_vm4 = vcmp.eq.f32.partialorder %v212_v10, 8.507059e+37 }
  0xbf   :  { %v241_v63 = vmul.f32 %v240_v60, %v221_v36  ;;  %v230_v14 = vmul.f32 %v229_v7, %v221_v36 }
  0xc1   :  { %v242_v0 = vadd.f32 1.0, %v241_v63  ;;  %v324_v1 = vpop.eup %323  ;;  %v231_v26 = vadd.f32 1.1283791, %v230_v14 }
  0xc2   :  { %v204_v4 = vmul.f32 %v324_v1, %v202_v56  ;;  %vm209_vm1 = vweird.f32 %v324_v1 }
  0xc3   :  { %325 = vrcp.f32 %v242_v0  ;;  %vm210_vm3 = vmor %vm208_vm2, %vm209_vm1  ;;  %v254_v24 = vand.u32 2147483648, %v242_v0  ;;  %v252_v29 = vand.u32 2147483647, %v242_v0  ;;  %vm248_vm6 = vweird.f32 %v242_v0 }
  0xc4   :  { %v205_v5 = vsub.f32 1.0, %v204_v4  ;;  %v232_v36 = vmul.f32 %v231_v26, %v499_v30 }
  0xc5   :  { %v255_v34 = vor.u32 1.1754944e-38, %v254_v24  ;;  %vm253_vm8 = vcmp.eq.f32.partialorder %v252_v29, 8.507059e+37 }
  0xc6   :  { %v206_v9 = vmul.f32 %v324_v1, %v205_v5 }
  0xc8   :  { %v207_v12 = vadd.f32 %v324_v1, %v206_v9 }
  0xc9   :  { %v326_v11 = vpop.eup %325 }
  0xca   :  { %v244_v15 = vmul.f32 %v326_v11, %v242_v0  ;;  %v211_v17 = vsel %vm210_vm3, %v324_v1, %v207_v12  ;;  %vm249_vm5 = vweird.f32 %v326_v11 }
  0xcb   :  { %v216_v18 = vsel %vm213_vm4, %v215_v13, %v211_v17  ;;  %vm250_vm7 = vmor %vm248_vm6, %vm249_vm5 }
  0xcc   :  { %v245_v19 = vsub.f32 1.0, %v244_v15  ;;  %v217_v21 = vmul.f32 %v216_v18, %v192_v16 }
  0xce   :  { %v246_v28 = vmul.f32 %v326_v11, %v245_v19  ;;  %v306_v31 = vclamps-f32 %v217_v21, 1.0 }
  0xd0   :  { %v247_v32 = vadd.f32 %v326_v11, %v246_v28  ;;  %v260_v35 = vadd.f32 1.0, %v306_v31 }
  0xd2   :  { %v251_v37 = vsel %vm250_vm7, %v326_v11, %v247_v32  ;;  %v262_v39 = vmul.f32 %v260_v35, %v176_v23 }
  0xd3   :  { %v256_v38 = vsel %vm253_vm8, %v255_v34, %v251_v37 }
  0xd4   :  { %v257_v40 = vmul.f32 %v256_v38, %v232_v36  ;;  %v264_v41 = vmul.f32 %v262_v39, %v166_v33 }
  0xd6   :  { %v307_v42 = vclamps-f32 %v257_v40, 1.0  ;;  %266 = vst.msk [vmem:[#allocation10] sm:$0xff] %vm73_vm0, %v264_v41 }
  0xd8   :  { %v261_v45 = vadd.f32 1.0, %v307_v42 }
  0xda   :  { %v263_v30 = vmul.f32 %v261_v45, %v177_v44 }
  0xdc   :  { %v265_v46 = vmul.f32 %v263_v30, %v167_v22 }
  0xde   :  { %267 = vst.msk [vmem:[#allocation10 + $0x8] sm:$0xff] %vm73_vm0, %v265_v46 }
  0xdf   :  { %280 = dma.vmem_to_hbm [thread:$0]  %s273_s12, 256, %s275_s15, [#allocation6], %s433_s30, %s433_s30, %s434_s6  }
  0xe0   :  { %427 = dma.done.wait [#allocation6], 256  }
  0xe1   :  { %428 = vsyncadd [#allocation6], 4294967040 }
  0xe2   :  { %285 = vsyncpa [#allocation5], 1 }
  0xe3   :  { %286 = vsyncpa [#allocation8], 1 }
  0xe4   :  { %287 = vsyncpa [#allocation6], 1 }

</bundles_post_ra>
